<compile_context>
chip_gen: v5e
topology: v5e:2x2
jax: 0.10.0
libtpu: 0.0.40
codegen_flags: <defaults>
</compile_context>

<pallas_src>
import jax
import jax.numpy as jnp
from jax.experimental import pallas as pl
from jax.experimental.pallas import tpu as pltpu


# ---------------------------------------------------------------------------
# Parameter setup (glue, plain JAX) — mirrors PriorLoss.get_precision_cov
# ---------------------------------------------------------------------------
def get_precision_cov(B, lambda_smooth=0.5, lambda_var=0.1):
    D = B.shape[0]
    centers = jnp.linspace(-1.0, 1.0, D, dtype=jnp.float32)
    dists = jnp.abs(centers[None, :] - centers[:, None])      # |c_j - c_i|
    cov_avees = jnp.exp(-(dists / lambda_smooth))
    cov_avees = cov_avees * cov_avees * (lambda_var * D) ** 2
    cov_cpa = B.T @ (cov_avees @ B)                            # (d, d)
    eps = jnp.eye(cov_cpa.shape[0], dtype=jnp.float32) * jnp.finfo(jnp.float32).eps
    # TODO(synk): matrix inverse has no clean Pallas equivalent; it is one-time
    # parameter setup, so it stays in plain JAX (jnp.linalg.inv).
    return jnp.linalg.inv(cov_cpa + eps)


# ---------------------------------------------------------------------------
# Pallas kernel
#   theta_ref: (N, T*C, d) f32 VMEM   (rows of every theta/channel, N leading)
#   prec_ref : (d, d)      f32 VMEM
#   scale_ref: (1, 1)      f32 SMEM   (0.1 / n_channels / N^2 folded constants)
#   out_ref  : (1, 1)      f32 SMEM   (final loss)
# loss = scale * sum_{t,c}  s_{t,c} @ P @ s_{t,c}^T,   s_{t,c} = sum_n theta
# (mean_{i,j}(theta P theta^T) == s P s^T / N^2, scale applied via SMEM.)
# ---------------------------------------------------------------------------
def _prior_loss_kernel(scale_ref, theta_ref, prec_ref, out_ref):
    s = jnp.sum(theta_ref[...], axis=0)                        # (T*C, d) VPU adds
    sp = jnp.dot(s, prec_ref[...],
                 preferred_element_type=jnp.float32)           # single MXU push
    out_ref[0, 0] = jnp.sum(sp * s) * scale_ref[0, 0]


# ---------------------------------------------------------------------------
# Forward pass (mirrors PriorLoss.forward) — single fused pallas_call
# ---------------------------------------------------------------------------
def prior_loss_forward(thetas, precision_cov, n_channels=1):
    prepped = []
    for theta in thetas:
        if theta.ndim == 2:
            theta = theta[:, None, :]                          # unsqueeze channel dim
        prepped.append(theta[:, :n_channels, :].astype(jnp.float32))
    # NOTE: the fused kernel assumes every theta in the list shares (N, d),
    # which stacking requires anyway (matches typical use of the module).
    theta_stack = jnp.stack(prepped, axis=0)                   # (T, N, C, d)
    T, N, C, d = theta_stack.shape
    # (N, T*C, d): leading-axis N-reduction in the kernel is N-1 vector adds;
    # (T*C, d) is the operand of the single matmul against P.
    theta_mat = jnp.transpose(theta_stack, (1, 0, 2, 3)).reshape(N, T * C, d)

    # Fold all constant factors (0.1, 1/n_channels, 1/N^2 from torch.mean).
    scale = jnp.full((1, 1), 0.1 / n_channels / (N * N), dtype=jnp.float32)

    out = pl.pallas_call(
        _prior_loss_kernel,
        out_shape=jax.ShapeDtypeStruct((1, 1), jnp.float32),
        in_specs=[
            pl.BlockSpec(memory_space=pltpu.SMEM),             # scale
            pl.BlockSpec(memory_space=pltpu.VMEM),             # theta (N, T*C, d)
            pl.BlockSpec(memory_space=pltpu.VMEM),             # precision (d, d)
        ],
        out_specs=pl.BlockSpec(memory_space=pltpu.SMEM),
    )(scale, theta_mat, precision_cov.astype(jnp.float32))

    return out[0, 0]


# ---------------------------------------------------------------------------
# Pure-JAX reference (original quadratic form, for a silent correctness check)
# ---------------------------------------------------------------------------
def _reference_loss(thetas, precision_cov, n_channels):
    loss = 0.0
    for theta in thetas:
        if theta.ndim == 2:
            theta = theta[:, None, :]
        for c in range(n_channels):
            th = theta[:, c, :].astype(jnp.float32)
            sn = th @ precision_cov @ th.T
            loss = loss + 0.1 * (1.0 / n_channels) * jnp.mean(sn)
    return loss


if __name__ == "__main__":
    # Small, deterministic problem sizes consistent with the module:
    #   D = 16 velocity-field cells, d = 8 reduced CPA params,
    #   N = 8 samples per theta, n_channels = 2, two thetas in the list.
    D, d = 16, 8
    N, C = 8, 2
    lambda_smooth, lambda_var = 0.5, 0.1

    key = jax.random.PRNGKey(0)
    kB, k1, k2 = jax.random.split(key, 3)

    # Deterministic stand-in for T.params.B (D x d basis matrix).
    B = jax.random.normal(kB, (D, d), dtype=jnp.float32)

    precision_cov = get_precision_cov(B, lambda_smooth, lambda_var)   # (d, d)

    theta0 = jax.random.normal(k1, (N, C, d), dtype=jnp.float32)
    theta1 = jax.random.normal(k2, (N, C, d), dtype=jnp.float32)
    thetas = [theta0, theta1]

    loss = prior_loss_forward(thetas, precision_cov, n_channels=C)
    loss = jax.block_until_ready(loss)

    ref = jax.block_until_ready(_reference_loss(thetas, precision_cov, C))
    assert jnp.allclose(loss, ref, rtol=1e-4, atol=1e-5), (loss, ref)

    print("KERNEL_OK")
</pallas_src>

<mosaic_0001>
module attributes {stable_mosaic.version = 11 : i64} {
  func.func @_prior_loss_kernel(%arg0: memref<1x1xf32, #tpu.memory_space<smem>>, %arg1: memref<8x4x8xf32, #tpu.memory_space<vmem>>, %arg2: memref<8x8xf32, #tpu.memory_space<vmem>>, %arg3: memref<1x1xf32, #tpu.memory_space<smem>>) attributes {dimension_semantics = [], scalar_prefetch = 0 : i64, scratch_operands = 0 : i64, tpu.core_type = #tpu.core_type<tc>} {
    %c0 = arith.constant 0 : index
    %c0_0 = arith.constant 0 : index
    %c0_1 = arith.constant 0 : index
    %0 = vector.load %arg1[%c0, %c0_0, %c0_1] : memref<8x4x8xf32, #tpu.memory_space<vmem>>, vector<8x4x8xf32>
    %cst = arith.constant dense<0.000000e+00> : vector<4x8xf32>
    %1 = vector.multi_reduction <add>, %0, %cst [0] : vector<8x4x8xf32> to vector<4x8xf32>
    %c0_2 = arith.constant 0 : index
    %c0_3 = arith.constant 0 : index
    %2 = vector.load %arg2[%c0_2, %c0_3] : memref<8x8xf32, #tpu.memory_space<vmem>>, vector<8x8xf32>
    %cst_4 = arith.constant dense<0.000000e+00> : vector<4x8xf32>
    %3 = tpu.matmul %1, %2, %cst_4 {dimension_numbers = #tpu.dot_dimension_numbers<[1], [0], [0], [1], [0, 0, 1, 1], [], []>} : vector<4x8xf32>, vector<8x8xf32>, vector<4x8xf32> -> vector<4x8xf32>
    %4 = arith.mulf %3, %1 : vector<4x8xf32>
    %5 = vector.shape_cast %4 : vector<4x8xf32> to vector<1x4x8xf32>
    %cst_5 = arith.constant dense<0.000000e+00> : vector<1xf32>
    %6 = vector.multi_reduction <add>, %5, %cst_5 [1, 2] : vector<1x4x8xf32> to vector<1xf32>
    %7 = vector.shape_cast %6 : vector<1xf32> to vector<1x1x1xf32>
    %8 = vector.extract %7[0, 0, 0] : f32 from vector<1x1x1xf32>
    %c0_6 = arith.constant 0 : index
    %c0_7 = arith.constant 0 : index
    %9 = memref.load %arg0[%c0_6, %c0_7] : memref<1x1xf32, #tpu.memory_space<smem>>
    %10 = arith.mulf %8, %9 : f32
    %c0_8 = arith.constant 0 : index
    %c0_9 = arith.constant 0 : index
    %11 = memref.load %arg3[%c0_8, %c0_9] : memref<1x1xf32, #tpu.memory_space<smem>>
    memref.store %10, %arg3[%c0_8, %c0_9] : memref<1x1xf32, #tpu.memory_space<smem>>
    return
  }
}

</mosaic_0001>

<bundles_post_ra>
// kernel: tpu_custom_call.1
= control target key start
LH: loop header
LB: loop body
LE: loop exit
PB: predicated region body
PF: predicated region fallthrough
CT: control target
= control target key end

     0   :  { %9 = vsyncpa [#allocation4], 0  ;;  %s247_s0 = inlined_call_operand.<no memory space> [shape: f32[1,1], index: 0, kind: input, shape index: {}]   ;;  %s248_s1 = inlined_call_operand.hbm [shape: f32[8,4,8], index: 1, kind: input, shape index: {}]   ;;  %s249_s2 = inlined_call_operand.hbm [shape: f32[8,8], index: 2, kind: input, shape index: {}]   ;;  %s250_s3 = inlined_call_operand.hbm [shape: f32[1,1], index: 3, kind: output, shape index: {}]  }
   0x1   :  { %10 = vsyncpa [#allocation7], 0 }
   0x2   :  { %11 = vsyncpa [#allocation5], 0  ;;  %s18_s14 = sshll.u32 %s248_s1, 4  ;;  %s201_s15 = smov [#allocation3]   ;;  %s19_s14 = int_to_ptr.hbm [resolvable:$true] %s18_s14 }
   0x3   :  { %s20_s16 = sshll.u32 %s201_s15, 4  ;;  %s32_s19 = sshll.u32 %s249_s2, 4  ;;  %s21_s16 = int_to_ptr.vmem [resolvable:$true] %s20_s16  ;;  %s33_s19 = int_to_ptr.hbm [resolvable:$true] %s32_s19 }
   0x4   :  { %s202_s20 = smov 64   ;;  %s203_s21 = smov 4  }
   0x5   :  { %26 = dma.hbm_to_vmem [thread:$0]  %s19_s14, 512, %s21_s16, [#allocation4], %s202_s20, %s202_s20, %s203_s21  }
   0x6   :  { %s204_s22 = smov [#allocation6]  }
   0x7   :  { %s34_s23 = sshll.u32 %s204_s22, 4  ;;  %s35_s23 = int_to_ptr.vmem [resolvable:$true] %s34_s23 }
   0x8   :  { %37 = dma.hbm_to_vmem [thread:$0]  %s33_s19, 128, %s35_s23, [#allocation7]  }
   0x9   :  { %195 = dma.done.wait [#allocation4], 512  }
   0xa   :  { %196 = vsyncadd [#allocation4], 4294966784 }
   0xb   :  { %197 = dma.done.wait [#allocation7], 128  }
   0xc   :  { %198 = vsyncadd [#allocation7], 4294967168  ;;  %v70_v0 = vld [vmem:[#allocation6] sm:$0xff]  ;;  %vm54_vm0 = vcmask 60416   ;;  %v48_v3 = vld [vmem:[#allocation3 + $0x8] sm:$0xf] }
   0xd   :  { %v46_v1 = vld [vmem:[#allocation3] sm:$0xf]  ;;  %v47_v2 = vld [vmem:[#allocation3 + $0x4] sm:$0xf]  ;;  %90 = vmatpush.msra.mxu0 %v70_v0  ;;  %v49_v4 = vld [vmem:[#allocation3 + $0xc] sm:$0xf] }
   0xe   :  { %v55_v5 = vsel %vm54_vm0, %v46_v1, 0.0  ;;  %v56_v6 = vsel %vm54_vm0, %v47_v2, 0.0  ;;  %v58_v7 = vsel %vm54_vm0, %v48_v3, 0.0  ;;  %v50_v8 = vld [vmem:[#allocation3 + $0x10] sm:$0xf]  ;;  %v60_v10 = vsel %vm54_vm0, %v49_v4, 0.0 }
   0xf   :  { %v57_v9 = vadd.f32 %v56_v6, %v55_v5  ;;  %v51_v11 = vld [vmem:[#allocation3 + $0x14] sm:$0xf]  ;;  %v62_v13 = vsel %vm54_vm0, %v50_v8, 0.0  ;;  %v52_v14 = vld [vmem:[#allocation3 + $0x18] sm:$0xf]  ;;  %vm71_vm1 = vcmask 64512  }
  0x10   :  { %v64_v16 = vsel %vm54_vm0, %v51_v11, 0.0  ;;  %v53_v17 = vld [vmem:[#allocation3 + $0x1c] sm:$0xf]  ;;  %v66_v19 = vsel %vm54_vm0, %v52_v14, 0.0  ;;  %s115_s24 = sshll.u32 %s250_s3, 4  ;;  %s205_s29 = smov [#allocation8]   ;;  %s116_s24 = int_to_ptr.hbm [resolvable:$true] %s115_s24 }
  0x11   :  { %v59_v12 = vadd.f32 %v58_v7, %v57_v9  ;;  %v68_v21 = vsel %vm54_vm0, %v53_v17, 0.0 }
  0x13   :  { %v61_v15 = vadd.f32 %v60_v10, %v59_v12 }
  0x15   :  { %v63_v18 = vadd.f32 %v62_v13, %v61_v15 }
  0x17   :  { %v65_v20 = vadd.f32 %v64_v16, %v63_v18 }
  0x19   :  { %v67_v22 = vadd.f32 %v66_v19, %v65_v20 }
  0x1b   :  { %v69_v23 = vadd.f32 %v68_v21, %v67_v22 }
  0x1d   :  { %127 = vmatmul.msk.f32.vlgmr.msra.gmra.mxu0 %vm71_vm1, %v69_v23 }
  0x9a   :  { %v92_v24 = vpop.f32.mrf.mxu0 }
  0x9b   :  { %v95_v25 = vmul.f32 %v92_v24, %v69_v23 }
  0x9d   :  { %v96_v26 = vsel %vm54_vm0, %v95_v25, 0.0 }
  0x9e   :  { %97 = vadd.xlane.f32.xlu0 %v96_v26 }
 0x111   :  { %v98_v27 = vpop.xlane.xlu0 %97 }
 0x112   :  { %v99_v28 = vrot.slane %v98_v27, 4 }
 0x114   :  { %v100_v29 = vadd.f32 %v99_v28, %v98_v27 }
 0x116   :  { %v101_v30 = vrot.slane %v100_v29, 2 }
 0x118   :  { %v102_v31 = vadd.f32 %v101_v30, %v100_v29 }
 0x11a   :  { %v103_v32 = vrot.slane %v102_v31, 1 }
 0x11c   :  { %v104_v33 = vadd.f32 %v103_v32, %v102_v31 }
 0x11e   :  { %128 = vpush %v104_v33 }
 0x14f   :  { %s129_s25 = spop %128 }
 0x150   :  { %s107_s28 = smul.f32 %s129_s25, %s247_s0 }
 0x152   :  { %109 = sst [smem:[#allocation8]] %s107_s28 }
 0x153   :  { %118 = dma.smem_to_hbm %s205_s29, 16, %s116_s24, [#allocation5]  }
 0x154   :  { %199 = dma.done.wait [#allocation5], 16  }
 0x155   :  { %200 = vsyncadd [#allocation5], 4294967280 }
 0x156   :  { %123 = sfence }
 0x157   :  { %124 = vsyncpa [#allocation4], 1 }
 0x158   :  { %125 = vsyncpa [#allocation7], 1 }
 0x159   :  { %126 = vsyncpa [#allocation5], 1 }

</bundles_post_ra>
